<compile_context>
chip_gen: v5e
topology: v5e:2x2
jax: 0.10.0
libtpu: 0.0.40
codegen_flags: <defaults>
</compile_context>

<pallas_src>
import functools

import jax
import jax.numpy as jnp
from jax.experimental import pallas as pl
from jax.experimental.pallas import tpu as pltpu

EPS = 1e-5

# MXU input dtype.  f32 keeps the tight 2e-3 accuracy check below on every
# generation.  On v6e/v7x set jnp.bfloat16 here (accumulation stays f32 via
# preferred_element_type) and relax the check to ~2e-2.
CONV_DTYPE = jnp.float32


def _conv3x3_one_matmul(x, mask_full, w_ref, W):
    """3x3 'same' conv over a channel-major flat activation, one MXU matmul.

    x         : (Cin, L) f32 value; column p encodes (n, h, w) as n*H*W + h*W + w
    mask_full : (9*Cin, L) f32; rows [t*Cin:(t+1)*Cin] are 0 where tap
                t = dy*3 + dx of column p falls outside the HxW image.  This
                both implements the 'same' zero padding and kills the
                row-/image-wrap columns introduced by the flat roll.
    w_ref     : Ref (Cout, 9*Cin); column = t*Cin + cin
    Returns (Cout, L) f32.
    """
    cin, L = x.shape
    taps = []
    for dy in range(3):
        for dx in range(3):
            s = (dy - 1) * W + (dx - 1)          # flat column shift for this tap
            if s == 0:
                taps.append(x)                   # center tap: no rotate needed
            else:
                # tap[:, p] = x[:, (p + s) mod L]; wrapped columns are masked.
                taps.append(pltpu.roll(x, shift=(-s) % L, axis=1))
    patches = jnp.concatenate(taps, axis=0) * mask_full          # (9*Cin, L)
    return jnp.dot(w_ref[...].astype(CONV_DTYPE),
                   patches.astype(CONV_DTYPE),
                   preferred_element_type=jnp.float32)            # (Cout, L) on MXU


def _bn_train(y, g_ref, be_ref):
    """Training-mode BN over (C, L): per-channel biased batch stats, centered."""
    inv_n = 1.0 / y.shape[1]
    mean = jnp.sum(y, axis=1, keepdims=True) * inv_n
    yc = y - mean
    var = jnp.sum(yc * yc, axis=1, keepdims=True) * inv_n
    return yc * (jax.lax.rsqrt(var + EPS) * g_ref[...]) + be_ref[...]


def residual_block_kernel(x_ref, mask_ref,
                          w1_ref, g1_ref, be1_ref,
                          w2_ref, g2_ref, be2_ref,
                          o_ref, *, W):
    """Fused conv1->bn1->relu->conv2->bn2->(+x)->relu in channel-major (C, L)."""
    x = x_ref[...]                         # (C, L); lane dim = N*H*W (dense)
    mask_full = mask_ref[...]              # (9*C, L); shared by both convs

    h = _conv3x3_one_matmul(x, mask_full, w1_ref, W)
    h = jnp.maximum(_bn_train(h, g1_ref, be1_ref), 0.0)   # h1 never leaves VMEM

    y = _conv3x3_one_matmul(h, mask_full, w2_ref, W)
    y = _bn_train(y, g2_ref, be2_ref)

    o_ref[...] = jnp.maximum(y + x, 0.0)   # unmasked lane-dense store


def _tap_major_weights(w):
    """(Cout, Cin, 3, 3) OIHW -> (Cout, 9*Cin); column = (dy*3+dx)*Cin + cin."""
    cout, cin = w.shape[0], w.shape[1]
    wt = jnp.transpose(w, (0, 2, 3, 1))                     # (Cout, 3, 3, Cin)
    return wt.reshape(cout, 9 * cin).astype(jnp.float32)


def _boundary_masks(N, H, W):
    """(9, N*H*W) f32; 1 where tap t of output column p reads inside the image."""
    p = jnp.arange(N * H * W, dtype=jnp.int32)
    hh = (p // W) % H
    ww = p % W
    rows = []
    for dy in range(3):
        for dx in range(3):
            oy, ox = dy - 1, dx - 1
            rows.append((hh + oy >= 0) & (hh + oy < H) &
                        (ww + ox >= 0) & (ww + ox < W))
    return jnp.stack(rows, axis=0).astype(jnp.float32)


@jax.jit
def residual_block(x_nchw, params):
    """Pallas forward. x_nchw: (N, C, H, W) f32; needs in_channels == out_channels."""
    w1, b1, g1, be1, w2, b2, g2, be2 = params
    # Conv bias before training-mode BN is cancelled exactly by the batch-mean
    # subtraction, so it is not passed into the kernel.
    del b1, b2
    N, C, H, W = x_nchw.shape
    L = N * H * W
    assert C == w1.shape[0], "residual add requires in_channels == out_channels"

    # Layout plumbing only (one XLA transpose): NCHW -> channel-major flat (C, L).
    # TODO(synk): if the caller can produce/consume channel-major data directly,
    # these two transposes (and their HBM round trip) can be dropped.
    x_cf = jnp.transpose(x_nchw, (1, 0, 2, 3)).reshape(C, L).astype(jnp.float32)

    # (9, L) boundary masks, pre-broadcast to (9*C, L) so the kernel applies
    # them with a single element-wise multiply per conv (compile-time constant).
    mask_full = jnp.repeat(_boundary_masks(N, H, W), C, axis=0)
    col = lambda v: v.reshape(-1, 1).astype(jnp.float32)

    vmem = pl.BlockSpec(memory_space=pltpu.MemorySpace.VMEM)
    out_cf = pl.pallas_call(
        functools.partial(residual_block_kernel, W=W),
        out_shape=jax.ShapeDtypeStruct((C, L), jnp.float32),
        in_specs=[vmem] * 8,
        out_specs=vmem,
    )(x_cf, mask_full,
      _tap_major_weights(w1), col(g1), col(be1),
      _tap_major_weights(w2), col(g2), col(be2))

    return jnp.transpose(out_cf.reshape(C, N, H, W), (1, 0, 2, 3))  # back to NCHW


def reference_forward(x_nchw, params):
    """Pure-JAX reference matching the PyTorch forward (training-mode BN)."""
    w1, b1, g1, be1, w2, b2, g2, be2 = params
    x = jnp.transpose(x_nchw, (0, 2, 3, 1)).astype(jnp.float32)

    def conv(h, w, b):
        whwio = jnp.transpose(w, (2, 3, 1, 0))  # OIHW -> HWIO
        y = jax.lax.conv_general_dilated(
            h, whwio, window_strides=(1, 1), padding="SAME",
            dimension_numbers=("NHWC", "HWIO", "NHWC"))
        return y + b

    def bn(h, g, be):
        mean = jnp.mean(h, axis=(0, 1, 2), keepdims=True)
        var = jnp.mean((h - mean) ** 2, axis=(0, 1, 2), keepdims=True)
        return (h - mean) * jax.lax.rsqrt(var + EPS) * g + be

    h = jnp.maximum(bn(conv(x, w1, b1), g1, be1), 0.0)
    h = bn(conv(h, w2, b2), g2, be2) + x
    h = jnp.maximum(h, 0.0)
    return jnp.transpose(h, (0, 3, 1, 2))


if __name__ == "__main__":
    # Small shapes consistent with the module; residual add requires Cin == Cout.
    N, C, H, W = 2, 4, 16, 16

    key = jax.random.PRNGKey(0)
    kx, kw1, kb1, kw2, kb2 = jax.random.split(key, 5)

    x = jax.random.normal(kx, (N, C, H, W), jnp.float32)

    # Deterministic synthetic parameters (torch BN default init: weight=1, bias=0).
    w1 = 0.1 * jax.random.normal(kw1, (C, C, 3, 3), jnp.float32)   # conv1 OIHW
    b1 = 0.1 * jax.random.normal(kb1, (C,), jnp.float32)
    g1 = jnp.ones((C,), jnp.float32)
    be1 = jnp.zeros((C,), jnp.float32)
    w2 = 0.1 * jax.random.normal(kw2, (C, C, 3, 3), jnp.float32)   # conv2 OIHW
    b2 = 0.1 * jax.random.normal(kb2, (C,), jnp.float32)
    g2 = jnp.ones((C,), jnp.float32)
    be2 = jnp.zeros((C,), jnp.float32)

    params = (w1, b1, g1, be1, w2, b2, g2, be2)

    out = residual_block(x, params)
    out = jax.block_until_ready(out)

    ref = jax.block_until_ready(reference_forward(x, params))
    assert out.shape == (N, C, H, W)
    assert jnp.allclose(out, ref, atol=2e-3, rtol=2e-3), (
        f"max abs err {float(jnp.max(jnp.abs(out - ref)))}")

    print("KERNEL_OK")
</pallas_src>

<mosaic_0001>
module attributes {stable_mosaic.version = 11 : i64} {
  func.func @residual_block_kernel(%arg0: memref<4x512xf32, #tpu.memory_space<vmem>>, %arg1: memref<36x512xf32, #tpu.memory_space<vmem>>, %arg2: memref<4x36xf32, #tpu.memory_space<vmem>>, %arg3: memref<4x1xf32, #tpu.memory_space<vmem>>, %arg4: memref<4x1xf32, #tpu.memory_space<vmem>>, %arg5: memref<4x36xf32, #tpu.memory_space<vmem>>, %arg6: memref<4x1xf32, #tpu.memory_space<vmem>>, %arg7: memref<4x1xf32, #tpu.memory_space<vmem>>, %arg8: memref<4x512xf32, #tpu.memory_space<vmem>>) attributes {dimension_semantics = [], scalar_prefetch = 0 : i64, scratch_operands = 0 : i64, tpu.core_type = #tpu.core_type<tc>} {
    %c0 = arith.constant 0 : index
    %c0_0 = arith.constant 0 : index
    %0 = vector.load %arg0[%c0, %c0_0] : memref<4x512xf32, #tpu.memory_space<vmem>>, vector<4x512xf32>
    %c0_1 = arith.constant 0 : index
    %c0_2 = arith.constant 0 : index
    %1 = vector.load %arg1[%c0_1, %c0_2] : memref<36x512xf32, #tpu.memory_space<vmem>>, vector<36x512xf32>
    %c17_i32 = arith.constant 17 : i32
    %2 = tpu.dynamic_rotate %0 by %c17_i32 dim 1 : vector<4x512xf32>, i32 -> vector<4x512xf32>
    %c16_i32 = arith.constant 16 : i32
    %3 = tpu.dynamic_rotate %0 by %c16_i32 dim 1 : vector<4x512xf32>, i32 -> vector<4x512xf32>
    %c15_i32 = arith.constant 15 : i32
    %4 = tpu.dynamic_rotate %0 by %c15_i32 dim 1 : vector<4x512xf32>, i32 -> vector<4x512xf32>
    %c1_i32 = arith.constant 1 : i32
    %5 = tpu.dynamic_rotate %0 by %c1_i32 dim 1 : vector<4x512xf32>, i32 -> vector<4x512xf32>
    %c511_i32 = arith.constant 511 : i32
    %6 = tpu.dynamic_rotate %0 by %c511_i32 dim 1 : vector<4x512xf32>, i32 -> vector<4x512xf32>
    %c497_i32 = arith.constant 497 : i32
    %7 = tpu.dynamic_rotate %0 by %c497_i32 dim 1 : vector<4x512xf32>, i32 -> vector<4x512xf32>
    %c496_i32 = arith.constant 496 : i32
    %8 = tpu.dynamic_rotate %0 by %c496_i32 dim 1 : vector<4x512xf32>, i32 -> vector<4x512xf32>
    %c495_i32 = arith.constant 495 : i32
    %9 = tpu.dynamic_rotate %0 by %c495_i32 dim 1 : vector<4x512xf32>, i32 -> vector<4x512xf32>
    %10 = tpu.concatenate %2, %3, %4, %5, %0, %6, %7, %8, %9 in 0 : vector<4x512xf32>, vector<4x512xf32>, vector<4x512xf32>, vector<4x512xf32>, vector<4x512xf32>, vector<4x512xf32>, vector<4x512xf32>, vector<4x512xf32>, vector<4x512xf32> -> vector<36x512xf32>
    %11 = arith.mulf %10, %1 : vector<36x512xf32>
    %c0_3 = arith.constant 0 : index
    %c0_4 = arith.constant 0 : index
    %12 = vector.load %arg2[%c0_3, %c0_4] : memref<4x36xf32, #tpu.memory_space<vmem>>, vector<4x36xf32>
    %cst = arith.constant dense<0.000000e+00> : vector<4x512xf32>
    %13 = tpu.matmul %12, %11, %cst {dimension_numbers = #tpu.dot_dimension_numbers<[1], [0], [0], [1], [0, 0, 1, 1], [], []>} : vector<4x36xf32>, vector<36x512xf32>, vector<4x512xf32> -> vector<4x512xf32>
    %cst_5 = arith.constant dense<0.000000e+00> : vector<4xf32>
    %14 = vector.multi_reduction <add>, %13, %cst_5 [1] : vector<4x512xf32> to vector<4xf32>
    %15 = vector.shape_cast %14 : vector<4xf32> to vector<4x1xf32>
    %cst_6 = arith.constant 0.001953125 : f32
    %16 = vector.broadcast %cst_6 : f32 to vector<4x1xf32>
    %17 = arith.mulf %15, %16 : vector<4x1xf32>
    %18 = vector.broadcast %17 : vector<4x1xf32> to vector<4x512xf32>
    %19 = arith.subf %13, %18 : vector<4x512xf32>
    %20 = arith.mulf %19, %19 : vector<4x512xf32>
    %cst_7 = arith.constant dense<0.000000e+00> : vector<4xf32>
    %21 = vector.multi_reduction <add>, %20, %cst_7 [1] : vector<4x512xf32> to vector<4xf32>
    %22 = vector.shape_cast %21 : vector<4xf32> to vector<4x1xf32>
    %cst_8 = arith.constant 0.001953125 : f32
    %23 = vector.broadcast %cst_8 : f32 to vector<4x1xf32>
    %24 = arith.mulf %22, %23 : vector<4x1xf32>
    %cst_9 = arith.constant 9.99999974E-6 : f32
    %25 = vector.broadcast %cst_9 : f32 to vector<4x1xf32>
    %26 = arith.addf %24, %25 : vector<4x1xf32>
    %27 = math.rsqrt %26 : vector<4x1xf32>
    %c0_10 = arith.constant 0 : index
    %c0_11 = arith.constant 0 : index
    %28 = vector.load %arg3[%c0_10, %c0_11] : memref<4x1xf32, #tpu.memory_space<vmem>>, vector<4x1xf32>
    %29 = arith.mulf %27, %28 : vector<4x1xf32>
    %30 = vector.broadcast %29 : vector<4x1xf32> to vector<4x512xf32>
    %31 = arith.mulf %19, %30 : vector<4x512xf32>
    %c0_12 = arith.constant 0 : index
    %c0_13 = arith.constant 0 : index
    %32 = vector.load %arg4[%c0_12, %c0_13] : memref<4x1xf32, #tpu.memory_space<vmem>>, vector<4x1xf32>
    %33 = vector.broadcast %32 : vector<4x1xf32> to vector<4x512xf32>
    %34 = arith.addf %31, %33 : vector<4x512xf32>
    %cst_14 = arith.constant 0.000000e+00 : f32
    %35 = vector.broadcast %cst_14 : f32 to vector<4x512xf32>
    %36 = arith.maximumf %34, %35 : vector<4x512xf32>
    %c17_i32_15 = arith.constant 17 : i32
    %37 = tpu.dynamic_rotate %36 by %c17_i32_15 dim 1 : vector<4x512xf32>, i32 -> vector<4x512xf32>
    %c16_i32_16 = arith.constant 16 : i32
    %38 = tpu.dynamic_rotate %36 by %c16_i32_16 dim 1 : vector<4x512xf32>, i32 -> vector<4x512xf32>
    %c15_i32_17 = arith.constant 15 : i32
    %39 = tpu.dynamic_rotate %36 by %c15_i32_17 dim 1 : vector<4x512xf32>, i32 -> vector<4x512xf32>
    %c1_i32_18 = arith.constant 1 : i32
    %40 = tpu.dynamic_rotate %36 by %c1_i32_18 dim 1 : vector<4x512xf32>, i32 -> vector<4x512xf32>
    %c511_i32_19 = arith.constant 511 : i32
    %41 = tpu.dynamic_rotate %36 by %c511_i32_19 dim 1 : vector<4x512xf32>, i32 -> vector<4x512xf32>
    %c497_i32_20 = arith.constant 497 : i32
    %42 = tpu.dynamic_rotate %36 by %c497_i32_20 dim 1 : vector<4x512xf32>, i32 -> vector<4x512xf32>
    %c496_i32_21 = arith.constant 496 : i32
    %43 = tpu.dynamic_rotate %36 by %c496_i32_21 dim 1 : vector<4x512xf32>, i32 -> vector<4x512xf32>
    %c495_i32_22 = arith.constant 495 : i32
    %44 = tpu.dynamic_rotate %36 by %c495_i32_22 dim 1 : vector<4x512xf32>, i32 -> vector<4x512xf32>
    %45 = tpu.concatenate %37, %38, %39, %40, %36, %41, %42, %43, %44 in 0 : vector<4x512xf32>, vector<4x512xf32>, vector<4x512xf32>, vector<4x512xf32>, vector<4x512xf32>, vector<4x512xf32>, vector<4x512xf32>, vector<4x512xf32>, vector<4x512xf32> -> vector<36x512xf32>
    %46 = arith.mulf %45, %1 : vector<36x512xf32>
    %c0_23 = arith.constant 0 : index
    %c0_24 = arith.constant 0 : index
    %47 = vector.load %arg5[%c0_23, %c0_24] : memref<4x36xf32, #tpu.memory_space<vmem>>, vector<4x36xf32>
    %cst_25 = arith.constant dense<0.000000e+00> : vector<4x512xf32>
    %48 = tpu.matmul %47, %46, %cst_25 {dimension_numbers = #tpu.dot_dimension_numbers<[1], [0], [0], [1], [0, 0, 1, 1], [], []>} : vector<4x36xf32>, vector<36x512xf32>, vector<4x512xf32> -> vector<4x512xf32>
    %cst_26 = arith.constant dense<0.000000e+00> : vector<4xf32>
    %49 = vector.multi_reduction <add>, %48, %cst_26 [1] : vector<4x512xf32> to vector<4xf32>
    %50 = vector.shape_cast %49 : vector<4xf32> to vector<4x1xf32>
    %cst_27 = arith.constant 0.001953125 : f32
    %51 = vector.broadcast %cst_27 : f32 to vector<4x1xf32>
    %52 = arith.mulf %50, %51 : vector<4x1xf32>
    %53 = vector.broadcast %52 : vector<4x1xf32> to vector<4x512xf32>
    %54 = arith.subf %48, %53 : vector<4x512xf32>
    %55 = arith.mulf %54, %54 : vector<4x512xf32>
    %cst_28 = arith.constant dense<0.000000e+00> : vector<4xf32>
    %56 = vector.multi_reduction <add>, %55, %cst_28 [1] : vector<4x512xf32> to vector<4xf32>
    %57 = vector.shape_cast %56 : vector<4xf32> to vector<4x1xf32>
    %cst_29 = arith.constant 0.001953125 : f32
    %58 = vector.broadcast %cst_29 : f32 to vector<4x1xf32>
    %59 = arith.mulf %57, %58 : vector<4x1xf32>
    %cst_30 = arith.constant 9.99999974E-6 : f32
    %60 = vector.broadcast %cst_30 : f32 to vector<4x1xf32>
    %61 = arith.addf %59, %60 : vector<4x1xf32>
    %62 = math.rsqrt %61 : vector<4x1xf32>
    %c0_31 = arith.constant 0 : index
    %c0_32 = arith.constant 0 : index
    %63 = vector.load %arg6[%c0_31, %c0_32] : memref<4x1xf32, #tpu.memory_space<vmem>>, vector<4x1xf32>
    %64 = arith.mulf %62, %63 : vector<4x1xf32>
    %65 = vector.broadcast %64 : vector<4x1xf32> to vector<4x512xf32>
    %66 = arith.mulf %54, %65 : vector<4x512xf32>
    %c0_33 = arith.constant 0 : index
    %c0_34 = arith.constant 0 : index
    %67 = vector.load %arg7[%c0_33, %c0_34] : memref<4x1xf32, #tpu.memory_space<vmem>>, vector<4x1xf32>
    %68 = vector.broadcast %67 : vector<4x1xf32> to vector<4x512xf32>
    %69 = arith.addf %66, %68 : vector<4x512xf32>
    %70 = arith.addf %69, %0 : vector<4x512xf32>
    %cst_35 = arith.constant 0.000000e+00 : f32
    %71 = vector.broadcast %cst_35 : f32 to vector<4x512xf32>
    %72 = arith.maximumf %70, %71 : vector<4x512xf32>
    %c0_36 = arith.constant 0 : index
    %c0_37 = arith.constant 0 : index
    %73 = vector.load %arg8[%c0_36, %c0_37] : memref<4x512xf32, #tpu.memory_space<vmem>>, vector<4x512xf32>
    tpu.vector_store %arg8[%c0_36, %c0_37], %72 {strides = array<i32>} : memref<4x512xf32, #tpu.memory_space<vmem>>, vector<4x512xf32>,
    return
  }
}

</mosaic_0001>

<bundles_post_ra>
// kernel: residual_block.1
= control target key start
LH: loop header
LB: loop body
LE: loop exit
PB: predicated region body
PF: predicated region fallthrough
CT: control target
= control target key end

     0   :  { %s906_s9 = smov 17   ;;  %s908_s10 = smov 15   ;;  %v72_v56 = vlaneseq  ;;  %vm306_vm6 = vcmask 1043456   ;;  %vm344_vm9 = vcmask 293888   ;;  %s1570_s0 = inlined_call_operand.vmem [shape: f32[4,512], index: 0, kind: input, shape index: {}]   ;;  %s1571_s1 = inlined_call_operand.vmem [shape: f32[36,512], index: 1, kind: input, shape index: {}]   ;;  %s1572_s2 = inlined_call_operand.vmem [shape: f32[4,36], index: 2, kind: input, shape index: {}]   ;;  %s1573_s4 = inlined_call_operand.vmem [shape: f32[4,1], index: 4, kind: input, shape index: {}]   ;;  %s1574_s3 = inlined_call_operand.vmem [shape: f32[4,1], index: 3, kind: input, shape index: {}]   ;;  %s1575_s5 = inlined_call_operand.vmem [shape: f32[4,36], index: 5, kind: input, shape index: {}]   ;;  %s1576_s6 = inlined_call_operand.vmem [shape: f32[4,1], index: 6, kind: input, shape index: {}]   ;;  %s1577_s7 = inlined_call_operand.vmem [shape: f32[4,1], index: 7, kind: input, shape index: {}]   ;;  %s1578_s8 = inlined_call_operand.vmem [shape: f32[4,512], index: 8, kind: output, shape index: {}]  }
   0x1   :  { %v963_v0 = vld [vmem:[%s1570_s0] sm:$0xff]  ;;  %v968_v1 = vld [vmem:[%s1570_s0 + $0x8] sm:$0xff]  ;;  %s907_s0 = smov 16   ;;  %s909_s11 = smov 1  }
   0x2   :  { %53 = vst [vmem:[#allocation1] ss:$2 sm:$0xff] %v963_v0  ;;  %s910_s12 = smov 127   ;;  %s911_s13 = smov 113   ;;  %v1056_v58 = vand.u32 127, %v72_v56  ;;  %v1169_v56 = vld [vmem:[%s1571_s1 + $0x70] sm:$0xff] }
   0x3   :  { %55 = vst [vmem:[#allocation1 + $0x10] ss:$2 sm:$0xff] %v968_v1  ;;  %s912_s14 = smov 112   ;;  %s913_s15 = smov 111  }
   0x4   :  { %vm98_vm0 = vcmp.lt.s32.totalorder %v1056_v58, 16  ;;  %vm74_vm1 = vcmp.lt.s32.totalorder %v1056_v58, 17  ;;  %vm170_vm2 = vcmp.lt.s32.totalorder %v1056_v58, 127  ;;  %vm146_vm3 = vcmp.lt.s32.totalorder %v1056_v58, 1 }
   0x5   :  { %vm218_vm4 = vcmp.lt.s32.totalorder %v1056_v58, 112  ;;  %vm122_vm5 = vcmp.lt.s32.totalorder %v1056_v58, 15  ;;  %vm194_vm7 = vcmp.lt.s32.totalorder %v1056_v58, 113  ;;  %vm242_vm8 = vcmp.lt.s32.totalorder %v1056_v58, 111 }
   0x9   :  { %v57_v2 = vld.sshfl [vmem:[#allocation1 + $0x8] sm:$0xff pattern:$0x75316420]  ;;  %v972_v3 = vld.sshfl [vmem:[#allocation1] sm:$0xff pattern:$0x75316420] }
   0xa   :  { %66 = vrot.lane.b32.xlu2 %v57_v2, %s906_s9  ;;  %79 = vst [vmem:[#allocation1] ss:$2 sm:$0xff] %v963_v0  ;;  %v58_v4 = vld.sshfl [vmem:[#allocation1 + $0x10] sm:$0xff pattern:$0x75316420] }
   0xb   :  { %68 = vrot.lane.b32.xlu0 %v58_v4, %s906_s9  ;;  %v977_v5 = vld.sshfl [vmem:[#allocation1 + $0x18] sm:$0xff pattern:$0x75316420] }
   0xc   :  { %81 = vst [vmem:[#allocation1 + $0x10] ss:$2 sm:$0xff] %v968_v1 }
  0x11   :  { %v83_v6 = vld.sshfl [vmem:[#allocation1 + $0x8] sm:$0xff pattern:$0x75316420]  ;;  %v980_v7 = vld.sshfl [vmem:[#allocation1] sm:$0xff pattern:$0x75316420] }
  0x12   :  { %92 = vrot.lane.b32.xlu1 %v83_v6, %s907_s0  ;;  %103 = vst [vmem:[#allocation1] ss:$2 sm:$0xff] %v963_v0 }
  0x13   :  { %v84_v8 = vld.sshfl [vmem:[#allocation1 + $0x10] sm:$0xff pattern:$0x75316420]  ;;  %v85_v9 = vld.sshfl [vmem:[#allocation1 + $0x18] sm:$0xff pattern:$0x75316420] }
  0x14   :  { %105 = vst [vmem:[#allocation1 + $0x10] ss:$2 sm:$0xff] %v968_v1  ;;  %94 = vrot.lane.b32.xlu2 %v84_v8, %s907_s0 }
  0x19   :  { %v107_v10 = vld.sshfl [vmem:[#allocation1 + $0x8] sm:$0xff pattern:$0x75316420]  ;;  %v986_v11 = vld.sshfl [vmem:[#allocation1] sm:$0xff pattern:$0x75316420] }
  0x1a   :  { %116 = vrot.lane.b32.xlu0 %v107_v10, %s908_s10  ;;  %127 = vst [vmem:[#allocation1] ss:$2 sm:$0xff] %v963_v0 }
  0x1b   :  { %v108_v12 = vld.sshfl [vmem:[#allocation1 + $0x10] sm:$0xff pattern:$0x75316420]  ;;  %v109_v13 = vld.sshfl [vmem:[#allocation1 + $0x18] sm:$0xff pattern:$0x75316420] }
  0x1c   :  { %129 = vst [vmem:[#allocation1 + $0x10] ss:$2 sm:$0xff] %v968_v1  ;;  %118 = vrot.lane.b32.xlu1 %v108_v12, %s908_s10 }
  0x21   :  { %v131_v14 = vld.sshfl [vmem:[#allocation1 + $0x8] sm:$0xff pattern:$0x75316420]  ;;  %v130_v15 = vld.sshfl [vmem:[#allocation1] sm:$0xff pattern:$0x75316420] }
  0x22   :  { %151 = vst [vmem:[#allocation1] ss:$2 sm:$0xff] %v963_v0 }
  0x23   :  { %v132_v16 = vld.sshfl [vmem:[#allocation1 + $0x10] sm:$0xff pattern:$0x75316420]  ;;  %v133_v17 = vld.sshfl [vmem:[#allocation1 + $0x18] sm:$0xff pattern:$0x75316420] }
  0x24   :  { %142 = vrot.lane.b32.xlu2 %v132_v16, %s909_s11  ;;  %140 = vrot.lane.b32.xlu1 %v131_v14, %s909_s11  ;;  %153 = vst [vmem:[#allocation1 + $0x10] ss:$2 sm:$0xff] %v968_v1 }
  0x29   :  { %v154_v18 = vld.sshfl [vmem:[#allocation1] sm:$0xff pattern:$0x75316420]  ;;  %v155_v19 = vld.sshfl [vmem:[#allocation1 + $0x8] sm:$0xff pattern:$0x75316420] }
  0x2a   :  { %162 = vrot.lane.b32.xlu0 %v154_v18, %s910_s12  ;;  %175 = vst [vmem:[#allocation1] ss:$2 sm:$0xff] %v963_v0 }
  0x2b   :  { %v157_v20 = vld.sshfl [vmem:[#allocation1 + $0x18] sm:$0xff pattern:$0x75316420]  ;;  %v156_v21 = vld.sshfl [vmem:[#allocation1 + $0x10] sm:$0xff pattern:$0x75316420] }
  0x2c   :  { %144 = vrot.lane.b32.xlu2 %v133_v17, %s909_s11  ;;  %177 = vst [vmem:[#allocation1 + $0x10] ss:$2 sm:$0xff] %v968_v1 }
  0x31   :  { %v178_v22 = vld.sshfl [vmem:[#allocation1] sm:$0xff pattern:$0x75316420]  ;;  %v179_v23 = vld.sshfl [vmem:[#allocation1 + $0x8] sm:$0xff pattern:$0x75316420] }
  0x32   :  { %164 = vrot.lane.b32.xlu0 %v155_v19, %s910_s12  ;;  %199 = vst [vmem:[#allocation1] ss:$2 sm:$0xff] %v963_v0 }
  0x33   :  { %v181_v24 = vld.sshfl [vmem:[#allocation1 + $0x18] sm:$0xff pattern:$0x75316420]  ;;  %v180_v25 = vld.sshfl [vmem:[#allocation1 + $0x10] sm:$0xff pattern:$0x75316420] }
  0x34   :  { %166 = vrot.lane.b32.xlu2 %v156_v21, %s910_s12  ;;  %192 = vrot.lane.b32.xlu1 %v181_v24, %s911_s13  ;;  %201 = vst [vmem:[#allocation1 + $0x10] ss:$2 sm:$0xff] %v968_v1  ;;  %v1119_v24 = vld [vmem:[%s1571_s1 + $0x88] sm:$0xf] }
  0x39   :  { %v202_v26 = vld.sshfl [vmem:[#allocation1] sm:$0xff pattern:$0x75316420]  ;;  %v203_v27 = vld.sshfl [vmem:[#allocation1 + $0x8] sm:$0xff pattern:$0x75316420] }
  0x3a   :  { %190 = vrot.lane.b32.xlu0 %v180_v25, %s911_s13  ;;  %223 = vst [vmem:[#allocation1] ss:$2 sm:$0xff] %v963_v0 }
  0x3b   :  { %v204_v28 = vld.sshfl [vmem:[#allocation1 + $0x10] sm:$0xff pattern:$0x75316420]  ;;  %v205_v29 = vld.sshfl [vmem:[#allocation1 + $0x18] sm:$0xff pattern:$0x75316420] }
  0x3c   :  { %168 = vrot.lane.b32.xlu2 %v157_v20, %s910_s12  ;;  %186 = vrot.lane.b32.xlu1 %v178_v22, %s911_s13  ;;  %225 = vst [vmem:[#allocation1 + $0x10] ss:$2 sm:$0xff] %v968_v1 }
  0x41   :  { %v226_v30 = vld.sshfl [vmem:[#allocation1] sm:$0xff pattern:$0x75316420]  ;;  %v227_v31 = vld.sshfl [vmem:[#allocation1 + $0x8] sm:$0xff pattern:$0x75316420] }
  0x42   :  { %214 = vrot.lane.b32.xlu0 %v204_v28, %s912_s14  ;;  %271 = vst [vmem:[#allocation1] ss:$2 sm:$0xff] %v963_v0 }
  0x43   :  { %v228_v32 = vld.sshfl [vmem:[#allocation1 + $0x10] sm:$0xff pattern:$0x75316420]  ;;  %v229_v33 = vld.sshfl [vmem:[#allocation1 + $0x18] sm:$0xff pattern:$0x75316420] }
  0x44   :  { %188 = vrot.lane.b32.xlu1 %v179_v23, %s911_s13  ;;  %210 = vrot.lane.b32.xlu2 %v202_v26, %s912_s14  ;;  %273 = vst [vmem:[#allocation1 + $0x10] ss:$2 sm:$0xff] %v968_v1  ;;  %v1114_v23 = vld [vmem:[%s1571_s1 + $0x80] sm:$0xf] }
  0x49   :  { %v1038_v37 = vld.sshfl [vmem:[#allocation1] sm:$0xff pattern:$0x75316420]  ;;  %v1040_v38 = vld.sshfl [vmem:[#allocation1 + $0x8] sm:$0xff pattern:$0x75316420] }
  0x4a   :  { %216 = vrot.lane.b32.xlu0 %v205_v29, %s912_s14  ;;  %840 = vst [vmem:[#allocation1] ss:$2 sm:$0xff] %v963_v0 }
  0x4b   :  { %v276_v43 = vld.sshfl [vmem:[#allocation1 + $0x10] sm:$0xff pattern:$0x75316420]  ;;  %v1049_v44 = vld.sshfl [vmem:[#allocation1 + $0x18] sm:$0xff pattern:$0x75316420] }
  0x4c   :  { %96 = vrot.lane.b32.xlu1 %v85_v9, %s907_s0  ;;  %212 = vrot.lane.b32.xlu2 %v203_v27, %s912_s14  ;;  %842 = vst [vmem:[#allocation1 + $0x10] ss:$2 sm:$0xff] %v968_v1 }
  0x52   :  { %234 = vrot.lane.b32.xlu0 %v226_v30, %s913_s15 }
  0x54   :  { %238 = vrot.lane.b32.xlu1 %v228_v32, %s913_s15  ;;  %120 = vrot.lane.b32.xlu2 %v109_v13, %s908_s10 }
  0x5a   :  { %236 = vrot.lane.b32.xlu0 %v227_v31, %s913_s15 }
  0x5c   :  { %240 = vrot.lane.b32.xlu1 %v229_v33, %s913_s15  ;;  %90 = vrot.lane.b32.xlu2 %v980_v7, %s907_s0 }
  0x62   :  { %138 = vrot.lane.b32.xlu0 %v130_v15, %s909_s11 }
  0x64   :  { %70 = vrot.lane.b32.xlu1 %v977_v5, %s906_s9  ;;  %v1032_v34 = vpop.permute.xlu2 %66 }
  0x6a   :  { %114 = vrot.lane.b32.xlu0 %v986_v11, %s908_s10 }
  0x6c   :  { %64 = vrot.lane.b32.xlu1 %v972_v3, %s906_s9 }
  0x6e   :  { %v1034_v35 = vpop.permute.xlu2 %94 }
  0x7d   :  { %v1036_v36 = vpop.permute.xlu0 %68 }
  0x7e   :  { %v143_v40 = vpop.permute.xlu2 %142  ;;  %v1082_v4 = vsel %vm74_vm1, %v1032_v34, %v1036_v36 }
  0x84   :  { %v1042_v39 = vpop.permute.xlu1 %92 }
  0x85   :  { %v1065_v61 = vsel %vm98_vm0, %v1042_v39, %v1034_v35 }
  0x86   :  { %v1052_v45 = vpop.permute.xlu2 %144  ;;  %v253_v3 = vrot.slane %v1065_v61, 4 }
  0x87   :  { %v1099_v14 = vsel %vm146_vm3, %v143_v40, %v1052_v45 }
  0x8c   :  { %v1045_v41 = vpop.permute.xlu0 %116 }
  0x8e   :  { %v1047_v42 = vpop.permute.xlu1 %118  ;;  %v167_v49 = vpop.permute.xlu2 %166 }
  0x8f   :  { %v124_v15 = vsel %vm122_vm5, %v1045_v41, %v1047_v42 }
  0x96   :  { %v1054_v47 = vpop.permute.xlu1 %140  ;;  %v169_v53 = vpop.permute.xlu2 %168 }
  0x97   :  { %v171_v63 = vsel %vm170_vm2, %v167_v49, %v169_v53  ;;  %v148_v7 = vsel %vm146_vm3, %v1054_v47, %v143_v40 }
  0x98   :  { %v288_v6 = vrot.slane %v171_v63, 4  ;;  %v265_v17 = vrot.slane %v148_v7, 4  ;;  %v1181_v63 = vld [vmem:[%s1571_s1 + $0x40] sm:$0xff] }
  0x9a   :  { %v317_v25 = vsel %vm306_vm6, %v276_v43, %v288_v6  ;;  %v1195_v6 = vld [vmem:[%s1571_s1 + $0x48] sm:$0xff] }
  0x9c   :  { %v163_v46 = vpop.permute.xlu0 %162 }
  0x9d   :  { %v174_v16 = vsel %vm170_vm2, %v169_v53, %v163_v46 }
  0x9e   :  { %v211_v57 = vpop.permute.xlu2 %210  ;;  %v289_v26 = vrot.slane %v174_v16, 4 }
  0xa4   :  { %v165_v48 = vpop.permute.xlu0 %164 }
  0xa5   :  { %v172_v1 = vsel %vm170_vm2, %v165_v48, %v167_v49  ;;  %v173_v2 = vsel %vm170_vm2, %v163_v46, %v165_v48 }
  0xa6   :  { %v193_v50 = vpop.permute.xlu1 %192  ;;  %v213_v62 = vpop.permute.xlu2 %212  ;;  %v286_v10 = vrot.slane %v173_v2, 4  ;;  %v287_v11 = vrot.slane %v172_v1, 4 }
  0xa7   :  { %v221_v8 = vsel %vm218_vm4, %v211_v57, %v213_v62 }
  0xa8   :  { %v298_v18 = vrot.slane %v221_v8, 4  ;;  %v315_v29 = vsel %vm306_vm6, %v1038_v37, %v286_v10  ;;  %v316_v30 = vsel %vm306_vm6, %v1040_v38, %v287_v11  ;;  %v1141_v37 = vld [vmem:[%s1571_s1 + $0x90] sm:$0xf]  ;;  %v1146_v38 = vld [vmem:[%s1571_s1 + $0x98] sm:$0xf]  ;;  %v318_v10 = vsel %vm306_vm6, %v1049_v44, %v289_v26 }
  0xa9   :  { %v313_v11 = vsel %vm306_vm6, %v124_v15, %v265_v17  ;;  %v332_v44 = vmul.f32 %v316_v30, %v1195_v6  ;;  %v1225_v15 = vld [vmem:[%s1571_s1 + $0x30] sm:$0xff]  ;;  %v1230_v17 = vld [vmem:[%s1571_s1 + $0x38] sm:$0xff] }
  0xac   :  { %v191_v51 = vpop.permute.xlu0 %190 }
  0xad   :  { %v195_v27 = vsel %vm194_vm7, %v191_v51, %v193_v50 }
  0xae   :  { %v187_v52 = vpop.permute.xlu1 %186  ;;  %v1130_v32 = vpop.permute.xlu2 %120 }
  0xaf   :  { %v198_v31 = vsel %vm194_vm7, %v193_v50, %v187_v52  ;;  %v1153_v50 = vld [vmem:[%s1571_s1 + $0x60] sm:$0xff]  ;;  %v123_v1 = vsel %vm122_vm5, %v1047_v42, %v1130_v32  ;;  %v1202_v42 = vld [vmem:[%s1571_s1 + $0x50] sm:$0xff] }
  0xb4   :  { %v215_v54 = vpop.permute.xlu0 %214 }
  0xb5   :  { %v220_v9 = vsel %vm218_vm4, %v213_v62, %v215_v54 }
  0xb6   :  { %v189_v55 = vpop.permute.xlu1 %188  ;;  %v299_v19 = vrot.slane %v220_v9, 4  ;;  %v1207_v9 = vld [vmem:[%s1571_s1 + $0x58] sm:$0xff]  ;;  %v91_v30 = vpop.permute.xlu2 %90 }
  0xb7   :  { %v197_v20 = vsel %vm194_vm7, %v187_v52, %v189_v55  ;;  %v196_v33 = vsel %vm194_vm7, %v189_v55, %v191_v51  ;;  %v1159_v52 = vld [vmem:[%s1571_s1 + $0x68] sm:$0xff] }
  0xb8   :  { %v319_v51 = vsel %vm306_vm6, %v197_v20, %v298_v18  ;;  %v320_v53 = vsel %vm306_vm6, %v196_v33, %v299_v19  ;;  %v334_v19 = vmul.f32 %v318_v10, %v1207_v9 }
  0xb9   :  { %v335_v7 = vmul.f32 %v319_v51, %v1153_v50  ;;  %v336_v8 = vmul.f32 %v320_v53, %v1159_v52  ;;  %v1281_v51 = vld [vmem:[%s1571_s1 + $0x28] sm:$0xff] }
  0xbc   :  { %v217_v59 = vpop.permute.xlu0 %216 }
  0xbd   :  { %v219_v12 = vsel %vm218_vm4, %v215_v54, %v217_v59  ;;  %v222_v13 = vsel %vm218_vm4, %v217_v59, %v211_v57  ;;  %v1175_v59 = vld [vmem:[%s1571_s1 + $0x78] sm:$0xff] }
  0xbe   :  { %v1058_v60 = vpop.permute.xlu1 %96  ;;  %v300_v21 = vrot.slane %v219_v12, 4  ;;  %v301_v22 = vrot.slane %v222_v13, 4 }
  0xbf   :  { %v99_v16 = vsel %vm98_vm0, %v1034_v35, %v1058_v60  ;;  %v333_v35 = vmul.f32 %v317_v25, %v1202_v42  ;;  %v329_v25 = vmul.f32 %v313_v11, %v1225_v15 }
  0xc0   :  { %v321_v57 = vsel %vm306_vm6, %v195_v27, %v300_v21  ;;  %v322_v62 = vsel %vm306_vm6, %v198_v31, %v301_v22  ;;  %v1238_v21 = vld [vmem:[%s1571_s1 + $0x10] sm:$0xff]  ;;  %v309_v22 = vsel %vm306_vm6, %v1082_v4, %v253_v3  ;;  %v254_v26 = vrot.slane %v99_v16, 4  ;;  %v343_v31 = vld [vmem:[%s1572_s2] sm:$0xf] }
  0xc1   :  { %v337_v12 = vmul.f32 %v321_v57, %v1169_v56  ;;  %v338_v13 = vmul.f32 %v322_v62, %v1175_v59  ;;  %v325_v3 = vmul.f32 %v309_v22, %v1238_v21 }
  0xc4   :  { %v235_v0 = vpop.permute.xlu0 %234 }
  0xc6   :  { %v239_v5 = vpop.permute.xlu1 %238 }
  0xcc   :  { %v237_v28 = vpop.permute.xlu0 %236 }
  0xcd   :  { %v244_v40 = vsel %vm242_vm8, %v237_v28, %v239_v5  ;;  %v245_v43 = vsel %vm242_vm8, %v235_v0, %v237_v28 }
  0xce   :  { %v241_v46 = vpop.permute.xlu1 %240  ;;  %v339_v48 = vmul.f32 %v245_v43, %v1114_v23  ;;  %v340_v49 = vmul.f32 %v244_v40, %v1119_v24  ;;  %v101_v43 = vsel %vm98_vm0, %v91_v30, %v1042_v39 }
  0xcf   :  { %v243_v54 = vsel %vm242_vm8, %v239_v5, %v241_v46  ;;  %v246_v55 = vsel %vm242_vm8, %v241_v46, %v235_v0  ;;  %v266_v0 = vrot.slane %v1099_v14, 4  ;;  %v331_v14 = vmul.f32 %v315_v29, %v1181_v63  ;;  %v1249_v29 = vld [vmem:[%s1571_s1 + $0x18] sm:$0xff] }
  0xd0   :  { %875 = vmatpush.msk.msra.mxu0 %vm306_vm6, %v339_v48  ;;  %877 = vmatpush.msk.msra.mxu1 %vm306_vm6, %v340_v49  ;;  %v341_v2 = vmul.f32 %v243_v54, %v1141_v37  ;;  %v342_v5 = vmul.f32 %v246_v55, %v1146_v38  ;;  %v102_v46 = vsel %vm98_vm0, %v1058_v60, %v91_v30  ;;  %v252_v53 = vrot.slane %v101_v43, 4 }
  0xd1   :  { %v314_v18 = vsel %vm306_vm6, %v123_v1, %v266_v0  ;;  %v251_v54 = vrot.slane %v102_v46, 4  ;;  %v1295_v0 = vld [vmem:[%s1571_s1] sm:$0xff] }
  0xd2   :  { %879 = vmatpush.msk.msra.mxu2 %vm306_vm6, %v341_v2  ;;  %881 = vmatpush.msk.msra.mxu3 %vm306_vm6, %v342_v5  ;;  %v330_v28 = vmul.f32 %v314_v18, %v1230_v17 }
  0xd3   :  { %372 = vmatpush.msra.mxu0 %v335_v7  ;;  %392 = vmatpush.msra.mxu1 %v336_v8 }
  0xd4   :  { %412 = vmatpush.msra.mxu2 %v337_v12  ;;  %432 = vmatpush.msra.mxu3 %v338_v13  ;;  %v139_v20 = vpop.permute.xlu0 %138 }
  0xd5   :  { %373 = vmatpush.msra.mxu0 %v331_v14  ;;  %393 = vmatpush.msra.mxu1 %v332_v44  ;;  %v149_v33 = vsel %vm146_vm3, %v139_v20, %v1054_v47 }
  0xd6   :  { %413 = vmatpush.msra.mxu2 %v333_v35  ;;  %v71_v27 = vpop.permute.xlu1 %70  ;;  %433 = vmatpush.msra.mxu3 %v334_v19  ;;  %v264_v47 = vrot.slane %v149_v33, 4 }
  0xd7   :  { %v75_v61 = vsel %vm74_vm1, %v1036_v36, %v71_v27  ;;  %v150_v36 = vsel %vm146_vm3, %v1052_v45, %v139_v20  ;;  %v1276_v45 = vld [vmem:[%s1571_s1 + $0x20] sm:$0xff] }
  0xd8   :  { %414 = vmatpush.msra.mxu2 %v329_v25  ;;  %434 = vmatpush.msra.mxu3 %v330_v28  ;;  %v310_v4 = vsel %vm306_vm6, %v75_v61, %v254_v26  ;;  %v263_v48 = vrot.slane %v150_v36, 4 }
  0xd9   :  { %v326_v40 = vmul.f32 %v310_v4, %v1249_v29 }
  0xda   :  { %415 = vmatpush.msra.mxu2 %v325_v3 }
  0xdb   :  { %435 = vmatpush.msra.mxu3 %v326_v40  ;;  %880 = vmatmul.msk.f32.vlgmr.msra.gmra.mxu2 %vm344_vm9, %v343_v31 }
  0xdc   :  { %v115_v49 = vpop.permute.xlu0 %114  ;;  %882 = vmatmul.msk.f32.vlgmr.msra.gmra.mxu3 %vm344_vm9, %v343_v31 }
  0xdd   :  { %v125_v39 = vsel %vm122_vm5, %v115_v49, %v1045_v41  ;;  %v126_v60 = vsel %vm122_vm5, %v1130_v32, %v115_v49  ;;  %v1300_v41 = vld [vmem:[%s1571_s1 + $0x8] sm:$0xff] }
  0xde   :  { %v65_v55 = vpop.permute.xlu1 %64  ;;  %v311_v57 = vsel %vm306_vm6, %v126_v60, %v263_v48  ;;  %v312_v62 = vsel %vm306_vm6, %v125_v39, %v264_v47  ;;  %v914_v39 = vmov 0   ;;  %v490_v60 = vld [vmem:[%s1573_s4] sm:$0xf] }
  0xdf   :  { %v77_v32 = vsel %vm74_vm1, %v65_v55, %v1032_v34  ;;  %v78_v1 = vsel %vm74_vm1, %v71_v27, %v65_v55  ;;  %v327_v2 = vmul.f32 %v311_v57, %v1276_v45  ;;  %v328_v5 = vmul.f32 %v312_v62, %v1281_v51  ;;  %900 = vset.pattern.permute.xlu1 %v914_v39 }
  0xe0   :  { %v307_v7 = vsel %vm306_vm6, %v78_v1, %v251_v54  ;;  %v308_v8 = vsel %vm306_vm6, %v77_v32, %v252_v53  ;;  %901 = vset.pattern.permute.xlu0 %v914_v39  ;;  %493 = vperm.xlu1 %900, %v490_v60  }
  0xe1   :  { %374 = vmatpush.msra.mxu0 %v327_v2  ;;  %394 = vmatpush.msra.mxu1 %v328_v5  ;;  %v323_v10 = vmul.f32 %v307_v7, %v1295_v0  ;;  %v324_v11 = vmul.f32 %v308_v8, %v1300_v41  ;;  %v479_v7 = vld [vmem:[%s1574_s3] sm:$0xf] }
  0xe3   :  { %375 = vmatpush.msra.mxu0 %v323_v10  ;;  %395 = vmatpush.msra.mxu1 %v324_v11 }
  0xe4   :  { %876 = vmatmul.msk.f32.vlgmr.msra.gmra.mxu0 %vm344_vm9, %v343_v31  ;;  %878 = vmatmul.msk.f32.vlgmr.msra.gmra.mxu1 %vm344_vm9, %v343_v31 }
 0x152   :  { %v494_v11 = vpop.permute.xlu1 %493 }
 0x15e   :  { %v417_v34 = vpop.f32.mrf.mxu2 }
 0x15f   :  { %v437_v12 = vpop.f32.mrf.mxu3  ;;  %v443_v18 = vsel %vm306_vm6, %v417_v34, 0.0 }
 0x160   :  { %v445_v19 = vsel %vm306_vm6, %v437_v12, 0.0 }
 0x161   :  { %v377_v13 = vpop.f32.mrf.mxu0  ;;  %v397_v14 = vpop.f32.mrf.mxu1 }
 0x162   :  { %v440_v16 = vsel %vm306_vm6, %v377_v13, 0.0  ;;  %v441_v44 = vsel %vm306_vm6, %v397_v14, 0.0 }
 0x163   :  { %v442_v35 = vadd.f32 %v441_v44, %v440_v16 }
 0x165   :  { %v444_v20 = vadd.f32 %v443_v18, %v442_v35 }
 0x167   :  { %v446_v22 = vadd.f32 %v445_v19, %v444_v20 }
 0x169   :  { %447 = vadd.xlane.f32.xlu2 %v446_v22 }
 0x1dc   :  { %v448_v26 = vpop.xlane.xlu2 %447 }
 0x1dd   :  { %v449_v27 = vmul.f32 0.001953125, %v448_v26 }
 0x1df   :  { %v450_v25 = vsub.f32 %v377_v13, %v449_v27  ;;  %v451_v28 = vsub.f32 %v397_v14, %v449_v27  ;;  %v452_v61 = vsub.f32 %v417_v34, %v449_v27  ;;  %v453_v30 = vsub.f32 %v437_v12, %v449_v27 }
 0x1e1   :  { %v454_v3 = vmul.f32 %v450_v25, %v450_v25  ;;  %v455_v4 = vmul.f32 %v451_v28, %v451_v28  ;;  %v456_v31 = vmul.f32 %v452_v61, %v452_v61  ;;  %v457_v33 = vmul.f32 %v453_v30, %v453_v30 }
 0x1e3   :  { %v458_v36 = vsel %vm306_vm6, %v454_v3, 0.0  ;;  %v459_v40 = vsel %vm306_vm6, %v455_v4, 0.0  ;;  %v461_v46 = vsel %vm306_vm6, %v456_v31, 0.0  ;;  %v463_v47 = vsel %vm306_vm6, %v457_v33, 0.0 }
 0x1e4   :  { %v460_v43 = vadd.f32 %v459_v40, %v458_v36 }
 0x1e6   :  { %v462_v48 = vadd.f32 %v461_v46, %v460_v43 }
 0x1e8   :  { %v464_v49 = vadd.f32 %v463_v47, %v462_v48 }
 0x1ea   :  { %465 = vadd.xlane.f32.xlu0 %v464_v49 }
 0x25d   :  { %v466_v53 = vpop.xlane.xlu0 %465 }
 0x25e   :  { %v467_v54 = vmul.f32 0.001953125, %v466_v53 }
 0x260   :  { %v468_v55 = vadd.f32 1e-05, %v467_v54 }
 0x262   :  { %902 = vrsqrt.f32 %v468_v55  ;;  %vm475_vm11 = vweird.f32 %v468_v55 }
 0x268   :  { %v903_v57 = vpop.eup %902 }
 0x269   :  { %v470_v62 = vmul.f32 %v903_v57, %v468_v55  ;;  %vm476_vm10 = vweird.f32 %v903_v57 }
 0x26a   :  { %vm477_vm12 = vmor %vm475_vm11, %vm476_vm10 }
 0x26b   :  { %v471_v32 = vmul.f32 %v903_v57, %v470_v62 }
 0x26d   :  { %v472_v1 = vmul.f32 0.5, %v471_v32 }
 0x26f   :  { %v473_v2 = vsub.f32 1.5, %v472_v1 }
 0x271   :  { %v474_v5 = vmul.f32 %v903_v57, %v473_v2 }
 0x273   :  { %v478_v8 = vsel %vm477_vm12, %v903_v57, %v474_v5 }
 0x274   :  { %v480_v10 = vmul.f32 %v479_v7, %v478_v8 }
 0x276   :  { %483 = vperm.xlu1 %900, %v480_v10  }
 0x2e8   :  { %v484_v34 = vpop.permute.xlu1 %483 }
 0x2e9   :  { %v488_v12 = vmul.f32 %v484_v34, %v452_v61  ;;  %v489_v13 = vmul.f32 %v484_v34, %v453_v30  ;;  %v486_v44 = vmul.f32 %v484_v34, %v450_v25  ;;  %v487_v22 = vmul.f32 %v484_v34, %v451_v28 }
 0x2eb   :  { %v498_v14 = vadd.f32 %v494_v11, %v488_v12  ;;  %v499_v16 = vadd.f32 %v494_v11, %v489_v13  ;;  %v496_v19 = vadd.f32 %v494_v11, %v486_v44  ;;  %v497_v26 = vadd.f32 %v494_v11, %v487_v22 }
 0x2ed   :  { %v1329_v18 = vmax.f32 %v498_v14, 0.0  ;;  %v1331_v35 = vmax.f32 %v499_v16, 0.0  ;;  %v1339_v20 = vmax.f32 %v496_v19, 0.0  ;;  %v1353_v27 = vmax.f32 %v497_v26, 0.0 }
 0x2ef   :  { %558 = vrot.lane.b32.xlu0 %v1331_v35, %s910_s12  ;;  %594 = vrot.lane.b32.xlu2 %v1331_v35, %s913_s15 }
 0x2f0   :  { %580 = vrot.lane.b32.xlu1 %v1329_v18, %s912_s14 }
 0x2f7   :  { %588 = vrot.lane.b32.xlu0 %v1339_v20, %s913_s15  ;;  %576 = vrot.lane.b32.xlu2 %v1339_v20, %s912_s14 }
 0x2f8   :  { %582 = vrot.lane.b32.xlu1 %v1331_v35, %s912_s14 }
 0x2ff   :  { %552 = vrot.lane.b32.xlu0 %v1339_v20, %s910_s12  ;;  %544 = vrot.lane.b32.xlu2 %v1329_v18, %s909_s11 }
 0x300   :  { %592 = vrot.lane.b32.xlu1 %v1329_v18, %s913_s15 }
 0x307   :  { %590 = vrot.lane.b32.xlu0 %v1353_v27, %s913_s15  ;;  %578 = vrot.lane.b32.xlu2 %v1353_v27, %s912_s14 }
 0x308   :  { %556 = vrot.lane.b32.xlu1 %v1329_v18, %s910_s12 }
 0x30f   :  { %530 = vrot.lane.b32.xlu0 %v1353_v27, %s908_s10  ;;  %520 = vrot.lane.b32.xlu2 %v1329_v18, %s907_s0 }
 0x310   :  { %568 = vrot.lane.b32.xlu1 %v1329_v18, %s911_s13 }
 0x317   :  { %554 = vrot.lane.b32.xlu0 %v1353_v27, %s910_s12  ;;  %546 = vrot.lane.b32.xlu2 %v1331_v35, %s909_s11 }
 0x318   :  { %570 = vrot.lane.b32.xlu1 %v1331_v35, %s911_s13 }
 0x31f   :  { %508 = vrot.lane.b32.xlu0 %v1329_v18, %s906_s9  ;;  %506 = vrot.lane.b32.xlu2 %v1353_v27, %s906_s9 }
 0x320   :  { %542 = vrot.lane.b32.xlu1 %v1353_v27, %s909_s11 }
 0x327   :  { %540 = vrot.lane.b32.xlu0 %v1339_v20, %s909_s11  ;;  %534 = vrot.lane.b32.xlu2 %v1331_v35, %s908_s10 }
 0x328   :  { %564 = vrot.lane.b32.xlu1 %v1339_v20, %s911_s13 }
 0x32f   :  { %528 = vrot.lane.b32.xlu0 %v1339_v20, %s908_s10  ;;  %516 = vrot.lane.b32.xlu2 %v1339_v20, %s907_s0 }
 0x330   :  { %518 = vrot.lane.b32.xlu1 %v1353_v27, %s907_s0 }
 0x338   :  { %532 = vrot.lane.b32.xlu1 %v1329_v18, %s908_s10 }
 0x340   :  { %566 = vrot.lane.b32.xlu1 %v1353_v27, %s911_s13 }
 0x348   :  { %522 = vrot.lane.b32.xlu1 %v1331_v35, %s907_s0 }
 0x349   :  { %v595_v61 = vpop.permute.xlu2 %594 }
 0x350   :  { %510 = vrot.lane.b32.xlu1 %v1331_v35, %s906_s9 }
 0x351   :  { %v1407_v33 = vpop.permute.xlu2 %576 }
 0x358   :  { %504 = vrot.lane.b32.xlu1 %v1339_v20, %s906_s9 }
 0x359   :  { %v545_v48 = vpop.permute.xlu2 %544 }
 0x361   :  { %v559_v25 = vpop.permute.xlu0 %558 }
 0x362   :  { %v1401_v28 = vpop.permute.xlu1 %580 }
 0x369   :  { %v589_v30 = vpop.permute.xlu0 %588 }
 0x36a   :  { %v583_v3 = vpop.permute.xlu1 %582  ;;  %v599_v4 = vsel %vm242_vm8, %v595_v61, %v589_v30 }
 0x36b   :  { %v683_v31 = vmul.f32 %v599_v4, %v1146_v38  ;;  %v584_v57 = vsel %vm218_vm4, %v1401_v28, %v583_v3  ;;  %v587_v14 = vsel %vm218_vm4, %v583_v3, %v1407_v33 }
 0x36c   :  { %v643_v44 = vrot.slane %v587_v14, 4 }
 0x36d   :  { %889 = vmatpush.msk.msrb.mxu3 %vm306_vm6, %v683_v31 }
 0x371   :  { %v553_v36 = vpop.permute.xlu0 %552 }
 0x372   :  { %v593_v40 = vpop.permute.xlu1 %592  ;;  %v563_v12 = vsel %vm170_vm2, %v559_v25, %v553_v36 }
 0x373   :  { %v596_v43 = vsel %vm242_vm8, %v593_v40, %v595_v61  ;;  %v631_v16 = vrot.slane %v563_v12, 4 }
 0x374   :  { %v682_v46 = vmul.f32 %v596_v43, %v1141_v37  ;;  %v579_v37 = vpop.permute.xlu2 %578 }
 0x375   :  { %v659_v22 = vsel %vm306_vm6, %v1331_v35, %v631_v16 }
 0x376   :  { %887 = vmatpush.msk.msrb.mxu2 %vm306_vm6, %v682_v46 }
 0x379   :  { %v591_v47 = vpop.permute.xlu0 %590 }
 0x37a   :  { %v557_v49 = vpop.permute.xlu1 %556  ;;  %v597_v39 = vsel %vm242_vm8, %v591_v47, %v593_v40  ;;  %v598_v38 = vsel %vm242_vm8, %v589_v30, %v591_v47 }
 0x37b   :  { %v680_v60 = vmul.f32 %v598_v38, %v1114_v23  ;;  %v681_v53 = vmul.f32 %v597_v39, %v1119_v24  ;;  %v560_v55 = vsel %vm170_vm2, %v557_v49, %v559_v25  ;;  %v642_v23 = vrot.slane %v584_v57, 4 }
 0x37c   :  { %v630_v62 = vrot.slane %v560_v55, 4  ;;  %v1433_v2 = vpop.permute.xlu2 %520  ;;  %v675_v25 = vmul.f32 %v659_v22, %v1207_v9 }
 0x37d   :  { %883 = vmatpush.msk.msrb.mxu0 %vm306_vm6, %v680_v60  ;;  %885 = vmatpush.msk.msrb.mxu1 %vm306_vm6, %v681_v53 }
 0x37e   :  { %v658_v7 = vsel %vm306_vm6, %v1329_v18, %v630_v62 }
 0x37f   :  { %v674_v10 = vmul.f32 %v658_v7, %v1202_v42 }
 0x381   :  { %v1428_v32 = vpop.permute.xlu0 %530 }
 0x382   :  { %v1421_v54 = vpop.permute.xlu1 %568 }
 0x384   :  { %v547_v13 = vpop.permute.xlu2 %546 }
 0x385   :  { %v548_v31 = vsel %vm146_vm3, %v545_v48, %v547_v13 }
 0x386   :  { %v619_v40 = vrot.slane %v548_v31, 4 }
 0x389   :  { %v555_v11 = vpop.permute.xlu0 %554 }
 0x38a   :  { %v571_v1 = vpop.permute.xlu1 %570  ;;  %v561_v43 = vsel %vm170_vm2, %v555_v11, %v557_v49  ;;  %v562_v39 = vsel %vm170_vm2, %v553_v36, %v555_v11 }
 0x38b   :  { %v572_v24 = vsel %vm194_vm7, %v1421_v54, %v571_v1  ;;  %v628_v62 = vrot.slane %v562_v39, 4 }
 0x38c   :  { %v662_v5 = vsel %vm306_vm6, %v572_v24, %v642_v23  ;;  %v1454_v61 = vpop.permute.xlu2 %506  ;;  %v629_v23 = vrot.slane %v561_v43, 4  ;;  %v586_v24 = vsel %vm218_vm4, %v1407_v33, %v579_v37 }
 0x38d   :  { %v678_v8 = vmul.f32 %v662_v5, %v1169_v56  ;;  %v656_v33 = vsel %vm306_vm6, %v1339_v20, %v628_v62 }
 0x38f   :  { %752 = vmatpush.msrb.mxu2 %v678_v8 }
 0x391   :  { %753 = vmatpush.msrb.mxu2 %v674_v10  ;;  %v1447_v18 = vpop.permute.xlu0 %508 }
 0x392   :  { %v543_v34 = vpop.permute.xlu1 %542  ;;  %v513_v38 = vsel %vm74_vm1, %v1454_v61, %v1447_v18 }
 0x394   :  { %v535_v9 = vpop.permute.xlu2 %534 }
 0x399   :  { %v541_v4 = vpop.permute.xlu0 %540 }
 0x39a   :  { %v565_v19 = vpop.permute.xlu1 %564  ;;  %v551_v8 = vsel %vm146_vm3, %v547_v13, %v541_v4 }
 0x39b   :  { %v575_v56 = vsel %vm194_vm7, %v571_v1, %v565_v19  ;;  %v585_v1 = vsel %vm218_vm4, %v579_v37, %v1401_v28  ;;  %v640_v28 = vrot.slane %v586_v24, 4  ;;  %v616_v20 = vrot.slane %v551_v8, 4 }
 0x39c   :  { %v663_v42 = vsel %vm306_vm6, %v575_v56, %v643_v44  ;;  %v641_v10 = vrot.slane %v585_v1, 4 }
 0x39d   :  { %v679_v26 = vmul.f32 %v663_v42, %v1175_v59  ;;  %v549_v59 = vsel %vm146_vm3, %v543_v34, %v545_v48 }
 0x39e   :  { %v618_v46 = vrot.slane %v549_v59, 4 }
 0x39f   :  { %772 = vmatpush.msrb.mxu3 %v679_v26 }
 0x3a1   :  { %773 = vmatpush.msrb.mxu3 %v675_v25  ;;  %v529_v7 = vpop.permute.xlu0 %528 }
 0x3a2   :  { %v1456_v30 = vpop.permute.xlu1 %518  ;;  %v538_v37 = vsel %vm122_vm5, %v529_v7, %v1428_v32 }
 0x3a3   :  { %v525_v3 = vsel %vm98_vm0, %v1456_v30, %v1433_v2 }
 0x3a4   :  { %v606_v35 = vrot.slane %v525_v3, 4 }
 0x3a6   :  { %v650_v55 = vsel %vm306_vm6, %v513_v38, %v606_v35 }
 0x3a7   :  { %v666_v5 = vmul.f32 %v650_v55, %v1238_v21  ;;  %v657_v21 = vsel %vm306_vm6, %v1353_v27, %v629_v23 }
 0x3aa   :  { %v533_v47 = vpop.permute.xlu1 %532 }
 0x3ab   :  { %v536_v60 = vsel %vm122_vm5, %v533_v47, %v535_v9  ;;  %v537_v48 = vsel %vm122_vm5, %v1428_v32, %v533_v47 }
 0x3ac   :  { %v654_v53 = vsel %vm306_vm6, %v537_v48, %v618_v46  ;;  %v655_v49 = vsel %vm306_vm6, %v536_v60, %v619_v40 }
 0x3ad   :  { %v670_v36 = vmul.f32 %v654_v53, %v1225_v15  ;;  %v671_v57 = vmul.f32 %v655_v49, %v1230_v17  ;;  %v684_v15 = vld [vmem:[%s1575_s5] sm:$0xf]  ;;  %v550_v17 = vsel %vm146_vm3, %v541_v4, %v543_v34  ;;  %v539_v34 = vsel %vm122_vm5, %v535_v9, %v529_v7 }
 0x3ae   :  { %v617_v14 = vrot.slane %v550_v17, 4  ;;  %v652_v56 = vsel %vm306_vm6, %v539_v34, %v616_v20 }
 0x3af   :  { %754 = vmatpush.msrb.mxu2 %v670_v36  ;;  %774 = vmatpush.msrb.mxu3 %v671_v57  ;;  %v668_v22 = vmul.f32 %v652_v56, %v1276_v45  ;;  %v517_v45 = vpop.permute.xlu2 %516 }
 0x3b0   :  { %v653_v42 = vsel %vm306_vm6, %v538_v37, %v617_v14 }
 0x3b1   :  { %755 = vmatpush.msrb.mxu2 %v666_v5  ;;  %v669_v26 = vmul.f32 %v653_v42, %v1281_v51  ;;  %v526_v51 = vsel %vm98_vm0, %v517_v45, %v1456_v30  ;;  %v830_v42 = vld [vmem:[%s1577_s7] sm:$0xf] }
 0x3b2   :  { %v567_v11 = vpop.permute.xlu1 %566  ;;  %888 = vmatmul.msk.f32.vlgmr.msrb.gmra.mxu2 %vm344_vm9, %v684_v15 }
 0x3b3   :  { %v573_v12 = vsel %vm194_vm7, %v567_v11, %v1421_v54  ;;  %v574_v13 = vsel %vm194_vm7, %v565_v19, %v567_v11  ;;  %v672_v54 = vmul.f32 %v656_v33, %v1181_v63  ;;  %v673_v19 = vmul.f32 %v657_v21, %v1195_v6 }
 0x3b4   :  { %v660_v27 = vsel %vm306_vm6, %v574_v13, %v640_v28  ;;  %v661_v16 = vsel %vm306_vm6, %v573_v12, %v641_v10 }
 0x3b5   :  { %v676_v44 = vmul.f32 %v660_v27, %v1153_v50  ;;  %v677_v32 = vmul.f32 %v661_v16, %v1159_v52 }
 0x3b7   :  { %712 = vmatpush.msrb.mxu0 %v676_v44  ;;  %732 = vmatpush.msrb.mxu1 %v677_v32  ;;  %v819_v44 = vld [vmem:[%s1576_s6] sm:$0xf] }
 0x3b9   :  { %713 = vmatpush.msrb.mxu0 %v672_v54  ;;  %733 = vmatpush.msrb.mxu1 %v673_v19 }
 0x3ba   :  { %v523_v25 = vpop.permute.xlu1 %522 }
 0x3bb   :  { %714 = vmatpush.msrb.mxu0 %v668_v22  ;;  %734 = vmatpush.msrb.mxu1 %v669_v26  ;;  %v524_v50 = vsel %vm98_vm0, %v1433_v2, %v523_v25  ;;  %v527_v31 = vsel %vm98_vm0, %v523_v25, %v517_v45  ;;  %v605_v2 = vrot.slane %v526_v51, 4 }
 0x3bc   :  { %v607_v52 = vrot.slane %v524_v50, 4  ;;  %v604_v59 = vrot.slane %v527_v31, 4  ;;  %v843_v50 = vld.sshfl [vmem:[#allocation1] sm:$0xff pattern:$0x75316420] }
 0x3c2   :  { %v511_v3 = vpop.permute.xlu1 %510 }
 0x3c3   :  { %v512_v63 = vsel %vm74_vm1, %v1447_v18, %v511_v3 }
 0x3c4   :  { %v651_v6 = vsel %vm306_vm6, %v512_v63, %v607_v52  ;;  %v844_v52 = vld.sshfl [vmem:[#allocation1 + $0x8] sm:$0xff pattern:$0x75316420]  ;;  %v846_v63 = vld.sshfl [vmem:[#allocation1 + $0x18] sm:$0xff pattern:$0x75316420] }
 0x3c5   :  { %v667_v4 = vmul.f32 %v651_v6, %v1249_v29 }
 0x3c7   :  { %775 = vmatpush.msrb.mxu3 %v667_v4 }
 0x3c8   :  { %890 = vmatmul.msk.f32.vlgmr.msrb.gmra.mxu3 %vm344_vm9, %v684_v15 }
 0x3ca   :  { %v505_v35 = vpop.permute.xlu1 %504 }
 0x3cb   :  { %v514_v18 = vsel %vm74_vm1, %v505_v35, %v1454_v61  ;;  %v515_v29 = vsel %vm74_vm1, %v511_v3, %v505_v35  ;;  %v845_v3 = vld.sshfl [vmem:[#allocation1 + $0x10] sm:$0xff pattern:$0x75316420] }
 0x3cc   :  { %v648_v40 = vsel %vm306_vm6, %v515_v29, %v604_v59  ;;  %v649_v30 = vsel %vm306_vm6, %v514_v18, %v605_v2 }
 0x3cd   :  { %v664_v9 = vmul.f32 %v648_v40, %v1295_v0  ;;  %v665_v43 = vmul.f32 %v649_v30, %v1300_v41 }
 0x3cf   :  { %715 = vmatpush.msrb.mxu0 %v664_v9  ;;  %735 = vmatpush.msrb.mxu1 %v665_v43 }
 0x3d0   :  { %884 = vmatmul.msk.f32.vlgmr.msrb.gmra.mxu0 %vm344_vm9, %v684_v15  ;;  %886 = vmatmul.msk.f32.vlgmr.msrb.gmra.mxu1 %vm344_vm9, %v684_v15 }
 0x435   :  { %v757_v46 = vpop.f32.mrf.mxu2 }
 0x436   :  { %v783_v60 = vsel %vm306_vm6, %v757_v46, 0.0 }
 0x44b   :  { %v777_v47 = vpop.f32.mrf.mxu3 }
 0x44c   :  { %v785_v0 = vsel %vm306_vm6, %v777_v47, 0.0 }
 0x44d   :  { %v717_v61 = vpop.f32.mrf.mxu0  ;;  %v737_v39 = vpop.f32.mrf.mxu1 }
 0x44e   :  { %v780_v58 = vsel %vm306_vm6, %v717_v61, 0.0  ;;  %v781_v38 = vsel %vm306_vm6, %v737_v39, 0.0 }
 0x44f   :  { %v782_v48 = vadd.f32 %v781_v38, %v780_v58 }
 0x451   :  { %v784_v41 = vadd.f32 %v783_v60, %v782_v48 }
 0x453   :  { %v786_v53 = vadd.f32 %v785_v0, %v784_v41 }
 0x455   :  { %787 = vadd.xlane.f32.xlu2 %v786_v53 }
 0x4c8   :  { %v788_v49 = vpop.xlane.xlu2 %787 }
 0x4c9   :  { %v789_v55 = vmul.f32 0.001953125, %v788_v49 }
 0x4cb   :  { %v790_v36 = vsub.f32 %v717_v61, %v789_v55  ;;  %v791_v57 = vsub.f32 %v737_v39, %v789_v55  ;;  %v792_v62 = vsub.f32 %v757_v46, %v789_v55  ;;  %v793_v23 = vsub.f32 %v777_v47, %v789_v55 }
 0x4cd   :  { %v794_v1 = vmul.f32 %v790_v36, %v790_v36  ;;  %v795_v24 = vmul.f32 %v791_v57, %v791_v57  ;;  %v796_v5 = vmul.f32 %v792_v62, %v792_v62  ;;  %v797_v15 = vmul.f32 %v793_v23, %v793_v23 }
 0x4cf   :  { %v798_v7 = vsel %vm306_vm6, %v794_v1, 0.0  ;;  %v799_v17 = vsel %vm306_vm6, %v795_v24, 0.0  ;;  %v801_v28 = vsel %vm306_vm6, %v796_v5, 0.0  ;;  %v803_v11 = vsel %vm306_vm6, %v797_v15, 0.0 }
 0x4d0   :  { %v800_v8 = vadd.f32 %v799_v17, %v798_v7 }
 0x4d2   :  { %v802_v10 = vadd.f32 %v801_v28, %v800_v8 }
 0x4d4   :  { %v804_v33 = vadd.f32 %v803_v11, %v802_v10 }
 0x4d6   :  { %805 = vadd.xlane.f32.xlu0 %v804_v33 }
 0x549   :  { %v806_v21 = vpop.xlane.xlu0 %805 }
 0x54a   :  { %v807_v37 = vmul.f32 0.001953125, %v806_v21 }
 0x54c   :  { %v808_v34 = vadd.f32 1e-05, %v807_v37 }
 0x54e   :  { %904 = vrsqrt.f32 %v808_v34  ;;  %vm815_vm14 = vweird.f32 %v808_v34 }
 0x554   :  { %v905_v12 = vpop.eup %904 }
 0x555   :  { %v810_v13 = vmul.f32 %v905_v12, %v808_v34  ;;  %vm816_vm13 = vweird.f32 %v905_v12 }
 0x556   :  { %vm817_vm15 = vmor %vm815_vm14, %vm816_vm13 }
 0x557   :  { %v811_v20 = vmul.f32 %v905_v12, %v810_v13 }
 0x559   :  { %v812_v14 = vmul.f32 0.5, %v811_v20 }
 0x55b   :  { %v813_v27 = vsub.f32 1.5, %v812_v14 }
 0x55d   :  { %v814_v16 = vmul.f32 %v905_v12, %v813_v27 }
 0x55f   :  { %v818_v32 = vsel %vm817_vm15, %v905_v12, %v814_v16 }
 0x560   :  { %v820_v56 = vmul.f32 %v819_v44, %v818_v32 }
 0x562   :  { %823 = vperm.xlu1 %900, %v820_v56  }
 0x56a   :  { %833 = vperm.xlu1 %900, %v830_v42  }
 0x5d4   :  { %v824_v54 = vpop.permute.xlu1 %823 }
 0x5d5   :  { %v826_v19 = vmul.f32 %v824_v54, %v790_v36  ;;  %v827_v22 = vmul.f32 %v824_v54, %v791_v57  ;;  %v828_v26 = vmul.f32 %v824_v54, %v792_v62  ;;  %v829_v25 = vmul.f32 %v824_v54, %v793_v23 }
 0x5dc   :  { %v834_v6 = vpop.permute.xlu1 %833 }
 0x5dd   :  { %v836_v4 = vadd.f32 %v834_v6, %v826_v19  ;;  %v837_v45 = vadd.f32 %v834_v6, %v827_v22  ;;  %v838_v51 = vadd.f32 %v834_v6, %v828_v26  ;;  %v839_v31 = vadd.f32 %v834_v6, %v829_v25 }
 0x5df   :  { %v851_v2 = vadd.f32 %v843_v50, %v836_v4  ;;  %v852_v59 = vadd.f32 %v844_v52, %v837_v45  ;;  %v853_v35 = vadd.f32 %v845_v3, %v838_v51  ;;  %v854_v18 = vadd.f32 %v846_v63, %v839_v31 }
 0x5e1   :  { %v856_v29 = vmax.f32 %v852_v59, 0.0  ;;  %v858_v40 = vmax.f32 %v854_v18, 0.0  ;;  %v855_v30 = vmax.f32 %v851_v2, 0.0  ;;  %v857_v9 = vmax.f32 %v853_v35, 0.0 }
 0x5e3   :  { %v863_v43 = vrot.slane %v856_v29, 4  ;;  %v864_v46 = vrot.slane %v858_v40, 4 }
 0x5e5   :  { %v865_v47 = vsel %vm306_vm6, %v855_v30, %v863_v43  ;;  %v866_v61 = vsel %vm306_vm6, %v857_v9, %v864_v46 }
 0x5e6   :  { %869 = vst [vmem:[%s1578_s8] sm:$0xff] %v865_v47 }
 0x5e7   :  { %870 = vst [vmem:[%s1578_s8 + $0x8] sm:$0xff] %v866_v61 }

</bundles_post_ra>
